<compile_context>
chip_gen: v7x
topology: tpu7x:2x2x1
jax: 0.10.0
libtpu: 0.0.40
codegen_flags: <defaults>
</compile_context>

<pallas_src>
import jax
import jax.numpy as jnp
from jax.experimental import pallas as pl
from jax.experimental.pallas import tpu as pltpu

_RHS = (12, 64)  # compile-time constant tuple from the module


def forward(x80: tuple) -> tuple:
    """Exact semantics of M.forward: operator.add on tuples == concatenation.

    Trace-time Python — no kernel launch, no DMA, no dispatch.
    """
    return tuple(x80) + _RHS


def _concat_dims_kernel(x_ref, o_ref):
    # x_ref: (2,) int32 in SMEM  -- the input "tuple" x80
    # o_ref: (4,) int32 in SMEM  -- concatenated result; (12, 64) baked in as
    #                              compile-time constants (no second input DMA).
    o_ref[0] = x_ref[0]
    o_ref[1] = x_ref[1]
    o_ref[2] = jnp.int32(_RHS[0])
    o_ref[3] = jnp.int32(_RHS[1])


# Build the pallas_call callable exactly once (module import time) so repeated
# eager calls never pay re-trace / re-lower cost, and wrap it in jax.jit so
# the custom call is cached by shape/dtype.
_SMEM_SPEC = pl.BlockSpec(memory_space=pltpu.MemorySpace.SMEM)
_concat_dims_call = jax.jit(
    pl.pallas_call(
        _concat_dims_kernel,
        out_shape=jax.ShapeDtypeStruct((4,), jnp.int32),
        in_specs=[_SMEM_SPEC],
        out_specs=_SMEM_SPEC,
    )
)


def tuple_add_device(x80_arr: jax.Array) -> jax.Array:
    """Device-array variant — test-only / only when a runtime array is required.

    Note: if the dims feed a downstream Pallas kernel, prefer passing them as
    scalar-prefetch args (PrefetchScalarGridSpec) or baking them as static ints
    instead of materializing this (4,) array.
    """
    # SMEM refs have no runtime bounds/dtype checks on TPU — validate up front.
    if x80_arr.shape != (2,):
        raise ValueError(f"expected shape (2,), got {x80_arr.shape}")
    if x80_arr.dtype != jnp.int32:
        x80_arr = x80_arr.astype(jnp.int32)
    return _concat_dims_call(x80_arr)


if __name__ == "__main__":
    _ = jax.random.PRNGKey(0)  # forward is pure shape math; no random tensors needed
    x80 = (1, 384)

    # Primary (optimized) path: trace-time tuple concatenation, zero device work.
    result = forward(x80)
    assert result == (1, 384, 12, 64), result

    # Kernel path (runtime-array variant), run once and verified against the
    # trace-time result.
    out = tuple_add_device(jnp.asarray(x80, dtype=jnp.int32))
    out = jax.block_until_ready(out)
    assert tuple(int(v) for v in out) == result, (out, result)

    print("KERNEL_OK")
</pallas_src>

<mosaic_0001>
module attributes {stable_mosaic.version = 11 : i64} {
  func.func @_concat_dims_kernel(%arg0: memref<2xi32, #tpu.memory_space<smem>>, %arg1: memref<4xi32, #tpu.memory_space<smem>>) attributes {dimension_semantics = [], scalar_prefetch = 0 : i64, scratch_operands = 0 : i64, tpu.core_type = #tpu.core_type<tc>} {
    %c0 = arith.constant 0 : index
    %0 = memref.load %arg0[%c0] : memref<2xi32, #tpu.memory_space<smem>>
    %c0_0 = arith.constant 0 : index
    %1 = memref.load %arg1[%c0_0] : memref<4xi32, #tpu.memory_space<smem>>
    memref.store %0, %arg1[%c0_0] : memref<4xi32, #tpu.memory_space<smem>>
    %c1 = arith.constant 1 : index
    %2 = memref.load %arg0[%c1] : memref<2xi32, #tpu.memory_space<smem>>
    %c1_1 = arith.constant 1 : index
    %3 = memref.load %arg1[%c1_1] : memref<4xi32, #tpu.memory_space<smem>>
    memref.store %2, %arg1[%c1_1] : memref<4xi32, #tpu.memory_space<smem>>
    %c12_i32 = arith.constant 12 : i32
    %c2 = arith.constant 2 : index
    %4 = memref.load %arg1[%c2] : memref<4xi32, #tpu.memory_space<smem>>
    memref.store %c12_i32, %arg1[%c2] : memref<4xi32, #tpu.memory_space<smem>>
    %c64_i32 = arith.constant 64 : i32
    %c3 = arith.constant 3 : index
    %5 = memref.load %arg1[%c3] : memref<4xi32, #tpu.memory_space<smem>>
    memref.store %c64_i32, %arg1[%c3] : memref<4xi32, #tpu.memory_space<smem>>
    return
  }
}

</mosaic_0001>

<bundles_post_ra>
// kernel: tpu_custom_call.1
= control target key start
LH: loop header
LB: loop body
LE: loop exit
PB: predicated region body
PF: predicated region fallthrough
CT: control target
= control target key end

     0   :  { %6 = vsyncpa [#allocation3], 0  ;;  %s111_s0 = inlined_call_operand.hbm [shape: s32[2], index: 0, kind: input, shape index: {}]   ;;  %s112_s1 = inlined_call_operand.hbm [shape: s32[4], index: 1, kind: output, shape index: {}]  }
   0x1   :  { %7 = vsyncpa [#allocation4], 0  ;;  %s49_s8 = scalar_lea.hbm %s111_s0, 16 }
   0x2   :  { %p50_p0 = scmp.ne.s32.totalorder %s111_s0, %s49_s8  ;;  %p53_p1 = scmp.lt.u32.totalorder %s49_s8, %s111_s0 }
   0x4   :  { %p55_p2 = pnand %p53_p1, %p50_p0 }
   0x6   :  { %58 = shalt.err (!%p55_p2)
}
   0x7   :  { %s73_s13 = smov [#allocation2]  }
   0x8   :  { %15 = dma.hbm_to_smem %s111_s0, 16, %s73_s13, [#allocation3]  }
   0x9   :  { %69 = dma.done.wait [#allocation3], 16  }
   0xa   :  { %70 = vsyncadd [#allocation3], 4294967280 }
   0xb   :  { %19 = sfence }
   0xc   :  { %s20_s16 = sld [smem:[#allocation2]]  ;;  %s44_s17 = sld [smem:[#allocation2 + $0x1]] }
   0xd   :  { %s74_s18 = smov 12   ;;  %s75_s19 = smov 64  }
   0xe   :  { %27 = sst [smem:[#allocation5 + $0x2]] %s74_s18  ;;  %s59_s22 = scalar_lea.hbm %s112_s1, 16 }
   0xf   :  { %29 = sst [smem:[#allocation5 + $0x3]] %s75_s19  ;;  %p60_p3 = scmp.ne.s32.totalorder %s112_s1, %s59_s22 }
  0x10   :  { %p63_p4 = scmp.lt.u32.totalorder %s59_s22, %s112_s1 }
  0x12   :  { %22 = sst [smem:[#allocation5]] %s20_s16  ;;  %p65_p5 = pnand %p63_p4, %p60_p3 }
  0x13   :  { %25 = sst [smem:[#allocation5 + $0x1]] %s44_s17 }
  0x14   :  { %68 = shalt.err (!%p65_p5)
}
  0x15   :  { %s76_s26 = smov [#allocation5]  }
  0x16   :  { %37 = dma.smem_to_hbm %s76_s26, 16, %s112_s1, [#allocation4]  }
  0x17   :  { %71 = dma.done.wait [#allocation4], 16  }
  0x18   :  { %72 = vsyncadd [#allocation4], 4294967280 }
  0x19   :  { %41 = sfence }
  0x1a   :  { %42 = vsyncpa [#allocation3], 1 }
  0x1b   :  { %43 = vsyncpa [#allocation4], 1 }

</bundles_post_ra>
